<compile_context>
chip_gen: v5e
topology: v5e:2x2
jax: 0.10.0
libtpu: 0.0.40
codegen_flags: <defaults>
</compile_context>

<pallas_src>
import numpy as np
import jax
import jax.numpy as jnp
from jax.experimental import pallas as pl
from jax.experimental.pallas import tpu as pltpu


def make_change_of_basis() -> jnp.ndarray:
    """Orthonormal change of basis for a general rank-2 cartesian tensor,
    decomposed as 0e + 1e + 2e (e3nn CartesianTensor('ij=ij') structure).
    Returns Q flattened to (9, 9): irrep_component x (3*i + j)."""
    # TODO(synk): signs / intra-irrep ordering follow standard real-SH
    # conventions (l=1 order y,z,x; l=2 order m=-2..2); exact e3nn
    # ReducedTensorProducts conventions may differ by a per-irrep orthogonal
    # map, and L1 is NOT invariant under that — verify against e3nn's
    # change_of_basis before trusting exact parity with the PyTorch module.
    Q = np.zeros((9, 3, 3), dtype=np.float64)
    # --- 0e: trace part ---
    Q[0] = np.eye(3) / np.sqrt(3.0)
    # --- 1e: antisymmetric part, vector components in e3nn order (y, z, x) ---
    eps = np.zeros((3, 3, 3))
    eps[0, 1, 2] = eps[1, 2, 0] = eps[2, 0, 1] = 1.0
    eps[0, 2, 1] = eps[2, 1, 0] = eps[1, 0, 2] = -1.0
    for m, k in enumerate((1, 2, 0)):  # y, z, x
        Q[1 + m] = eps[k] / np.sqrt(2.0)
    # --- 2e: symmetric traceless, real-SH order (xy, yz, 2zz-xx-yy, xz, xx-yy) ---
    def e(i, j):
        M = np.zeros((3, 3))
        M[i, j] = 1.0
        return M
    Q[4] = (e(0, 1) + e(1, 0)) / np.sqrt(2.0)
    Q[5] = (e(1, 2) + e(2, 1)) / np.sqrt(2.0)
    Q[6] = (2.0 * e(2, 2) - e(0, 0) - e(1, 1)) / np.sqrt(6.0)
    Q[7] = (e(0, 2) + e(2, 0)) / np.sqrt(2.0)
    Q[8] = (e(0, 0) - e(1, 1)) / np.sqrt(2.0)
    return jnp.asarray(Q.reshape(9, 9), dtype=jnp.float32)


def _round_up(x: int, m: int) -> int:
    return ((x + m - 1) // m) * m


def _make_kernel(n: int, tile: int, tiles_per_core: int):
    """Kernel closure over static sizes.

    d_ref   : (9, tile)  lane-dense pre-differenced irrep block (native dtype)
    qt_ref  : (9, 9)     transposed change-of-basis, f32
    out_ref : (8, 128)   per-core f32 accumulator block (every element holds
                         the running per-core total), resident across axis 1
    """
    def kernel(d_ref, qt_ref, out_ref):
        core = pl.program_id(0)
        step = pl.program_id(1)

        @pl.when(step == 0)
        def _init():
            out_ref[...] = jnp.zeros_like(out_ref)

        # Linearity: to_cartesian(yhat) - to_cartesian(y) == (yhat - y) @ Q,
        # computed in transposed (lane-dense) orientation as Q^T @ d^T.
        d = d_ref[...].astype(jnp.float32)                                # (9, tile)
        cart = jnp.dot(qt_ref[...], d, preferred_element_type=jnp.float32)
        a = jnp.abs(cart)                                                 # (9, tile)

        # Global row index of this block's first lane (ints are static Python).
        base = (core * tiles_per_core + step) * tile

        @pl.when(base + tile <= n)
        def _full():
            # Steady state: whole block is valid, no mask needed.
            out_ref[...] = out_ref[...] + jnp.sum(a)

        @pl.when(base + tile > n)
        def _ragged():
            # Ragged tail / duplicated (clamped) block: mask invalid lanes.
            lane = jax.lax.broadcasted_iota(jnp.int32, a.shape, 1)
            valid = (base + lane) < n
            out_ref[...] = out_ref[...] + jnp.sum(jnp.where(valid, a, 0.0))

    return kernel


def cart_l1_loss(yhat: jnp.ndarray, y: jnp.ndarray, *,
                 tile_lanes: int = 65536, num_cores: int = 2) -> jnp.ndarray:
    """Cart_L1Loss forward. tile_lanes is sweepable (v7x: 131072 also fits)."""
    assert yhat.shape == y.shape and yhat.ndim == 2 and yhat.shape[-1] == 9
    n = int(yhat.shape[0])
    assert n >= 1

    qt = make_change_of_basis().T  # (9, 9)

    # Single pre-differenced, lane-dense input: batch on the 128-lane axis, the
    # 9 irrep components on sublanes. Subtract + transpose (+ tiny pad) fuse
    # into one XLA pass. Keep the native dtype through HBM (bf16-friendly);
    # the kernel upcasts to f32.
    d_t = (yhat - y).T  # (9, N)

    # Pad only to the next multiple of 128 lanes (<=127 zero columns; zeros
    # contribute 0 to the L1 sum, so this is exact). Ragged tiles beyond this
    # are handled with an in-kernel mask — no full pad to a tile multiple.
    n128 = _round_up(n, 128)
    if n128 != n:
        d_t = jnp.pad(d_t, ((0, 0), (0, n128 - n)))

    tile = min(_round_up(tile_lanes, 128), n128)
    n_tiles = pl.cdiv(n128, tile)
    tiles_per_core = pl.cdiv(n_tiles, num_cores)
    last_tile = n_tiles - 1

    kernel = _make_kernel(n, tile, tiles_per_core)

    # Leading "parallel" axis of size num_cores shards the lane tiles across
    # TensorCores on v7x; on 1-TC chips it is just an outer serial loop.
    # Clamp the block index so no block is ever fully out of bounds; the
    # in-kernel mask zeroes any duplicated (clamped) block's contribution.
    in_specs = [
        pl.BlockSpec(
            (9, tile),
            lambda c, i: (0, jnp.minimum(c * tiles_per_core + i, last_tile)),
        ),
        pl.BlockSpec((9, 9), lambda c, i: (0, 0)),
    ]
    out_spec = pl.BlockSpec((8, 128), lambda c, i: (c, 0))

    out = pl.pallas_call(
        kernel,
        out_shape=jax.ShapeDtypeStruct((num_cores * 8, 128), jnp.float32),
        grid_spec=pltpu.PrefetchScalarGridSpec(
            num_scalar_prefetch=0,
            grid=(num_cores, tiles_per_core),
            in_specs=in_specs,
            out_specs=out_spec,
        ),
        compiler_params=pltpu.CompilerParams(
            # axis 0: per-core partial sums (independent output blocks)
            # axis 1: reduction into the resident per-core accumulator block
            dimension_semantics=("parallel", "arbitrary"),
            # single input double-buffered: 2 * 9*tile*4B ~= 4.7 MiB at 65536
            # lanes (9.4 MiB at 131072) — 32 MiB is safe on v5e/v6e/v7x
            vmem_limit_bytes=32 * 1024 * 1024,
        ),
    )(d_t, qt)

    # Every element of a per-core (8,128) block holds that core's total.
    total_abs = jnp.sum(out[::8, 0])

    # L1Loss is a mean over N*3*3 elements; the original loop adds it N times.
    mean_l1 = total_abs / jnp.float32(n * 9)
    loss = jnp.float32(n) * mean_l1
    return loss


if __name__ == "__main__":
    key = jax.random.PRNGKey(0)
    q = make_change_of_basis()

    # Small demo consistent with the module: batch of rank-2 tensors in irrep
    # form (0e+1e+2e => 9 components).
    k1, k2 = jax.random.split(key)
    N = 8
    yhat = jax.random.normal(k1, (N, 9), dtype=jnp.float32)
    y = jax.random.normal(k2, (N, 9), dtype=jnp.float32)

    loss = cart_l1_loss(yhat, y)
    jax.block_until_ready(loss)

    ref = N * jnp.mean(jnp.abs(yhat @ q - y @ q))
    assert jnp.allclose(loss, ref, rtol=1e-5, atol=1e-5), (loss, ref)

    # Exercise the ragged multi-tile / two-partial path with a tiny tile.
    k3, k4 = jax.random.split(k2)
    N2 = 300
    yhat2 = jax.random.normal(k3, (N2, 9), dtype=jnp.float32)
    y2 = jax.random.normal(k4, (N2, 9), dtype=jnp.float32)
    loss2 = cart_l1_loss(yhat2, y2, tile_lanes=128)
    jax.block_until_ready(loss2)
    ref2 = N2 * jnp.mean(jnp.abs(yhat2 @ q - y2 @ q))
    assert jnp.allclose(loss2, ref2, rtol=1e-5, atol=1e-4), (loss2, ref2)

    print("KERNEL_OK")
</pallas_src>

<mosaic_0001>
module attributes {stable_mosaic.version = 11 : i64} {
  func.func @kernel(%arg0: i32, %arg1: i32, %arg2: memref<9x128xf32, #tpu.memory_space<vmem>>, %arg3: memref<9x9xf32, #tpu.memory_space<vmem>>, %arg4: memref<8x128xf32, #tpu.memory_space<vmem>>) attributes {dimension_semantics = [#tpu.dimension_semantics<parallel>, #tpu.dimension_semantics<arbitrary>], iteration_bounds = array<i64: 2, 1>, scalar_prefetch = 0 : i64, scratch_operands = 0 : i64, tpu.core_type = #tpu.core_type<tc>, window_params = [{transform_indices = @transform_0, window_bounds = array<i64: 9, 128>}, {pipeline_mode = #tpu.pipeline_mode<synchronous>, transform_indices = @transform_1, window_bounds = array<i64: 9, 9>}, {transform_indices = @transform_2, window_bounds = array<i64: 8, 128>}]} {
    %c0_i32 = arith.constant 0 : i32
    %0 = arith.cmpi eq, %arg1, %c0_i32 : i32
    %1 = arith.extui %0 : i1 to i32
    %c0_i32_0 = arith.constant 0 : i32
    %2 = arith.cmpi ne, %1, %c0_i32_0 : i32
    scf.if %2 {
      %cst_9 = arith.constant 0.000000e+00 : f32
      %18 = vector.broadcast %cst_9 : f32 to vector<8x128xf32>
      %c0_10 = arith.constant 0 : index
      %c0_11 = arith.constant 0 : index
      %19 = vector.load %arg4[%c0_10, %c0_11] : memref<8x128xf32, #tpu.memory_space<vmem>>, vector<8x128xf32>
      tpu.vector_store %arg4[%c0_10, %c0_11], %18 {strides = array<i32>} : memref<8x128xf32, #tpu.memory_space<vmem>>, vector<8x128xf32>,
    } else {
    }
    %c0 = arith.constant 0 : index
    %c0_1 = arith.constant 0 : index
    %3 = vector.load %arg2[%c0, %c0_1] : memref<9x128xf32, #tpu.memory_space<vmem>>, vector<9x128xf32>
    %c0_2 = arith.constant 0 : index
    %c0_3 = arith.constant 0 : index
    %4 = vector.load %arg3[%c0_2, %c0_3] : memref<9x9xf32, #tpu.memory_space<vmem>>, vector<9x9xf32>
    %cst = arith.constant dense<0.000000e+00> : vector<9x128xf32>
    %5 = tpu.matmul %4, %3, %cst {dimension_numbers = #tpu.dot_dimension_numbers<[1], [0], [0], [1], [0, 0, 1, 1], [], []>} : vector<9x9xf32>, vector<9x128xf32>, vector<9x128xf32> -> vector<9x128xf32>
    %6 = math.absf %5 : vector<9x128xf32>
    %c1_i32 = arith.constant 1 : i32
    %7 = arith.muli %arg0, %c1_i32 : i32
    %8 = arith.addi %7, %arg1 : i32
    %c128_i32 = arith.constant 128 : i32
    %9 = arith.muli %8, %c128_i32 : i32
    %c128_i32_4 = arith.constant 128 : i32
    %10 = arith.addi %9, %c128_i32_4 : i32
    %c8_i32 = arith.constant 8 : i32
    %11 = arith.cmpi sle, %10, %c8_i32 : i32
    %12 = arith.extui %11 : i1 to i32
    %c0_i32_5 = arith.constant 0 : i32
    %13 = arith.cmpi ne, %12, %c0_i32_5 : i32
    scf.if %13 {
      %c0_9 = arith.constant 0 : index
      %c0_10 = arith.constant 0 : index
      %18 = vector.load %arg4[%c0_9, %c0_10] : memref<8x128xf32, #tpu.memory_space<vmem>>, vector<8x128xf32>
      %19 = vector.shape_cast %6 : vector<9x128xf32> to vector<1x9x128xf32>
      %cst_11 = arith.constant dense<0.000000e+00> : vector<1xf32>
      %20 = vector.multi_reduction <add>, %19, %cst_11 [1, 2] : vector<1x9x128xf32> to vector<1xf32>
      %21 = vector.shape_cast %20 : vector<1xf32> to vector<1x1x1xf32>
      %22 = vector.extract %21[0, 0, 0] : f32 from vector<1x1x1xf32>
      %23 = vector.broadcast %22 : f32 to vector<8x128xf32>
      %24 = arith.addf %18, %23 : vector<8x128xf32>
      %c0_12 = arith.constant 0 : index
      %c0_13 = arith.constant 0 : index
      %25 = vector.load %arg4[%c0_12, %c0_13] : memref<8x128xf32, #tpu.memory_space<vmem>>, vector<8x128xf32>
      tpu.vector_store %arg4[%c0_12, %c0_13], %24 {strides = array<i32>} : memref<8x128xf32, #tpu.memory_space<vmem>>, vector<8x128xf32>,
    } else {
    }
    %c128_i32_6 = arith.constant 128 : i32
    %14 = arith.addi %9, %c128_i32_6 : i32
    %c8_i32_7 = arith.constant 8 : i32
    %15 = arith.cmpi sgt, %14, %c8_i32_7 : i32
    %16 = arith.extui %15 : i1 to i32
    %c0_i32_8 = arith.constant 0 : i32
    %17 = arith.cmpi ne, %16, %c0_i32_8 : i32
    scf.if %17 {
      %18 = tpu.iota {dimensions = array<i32: 1>} : vector<9x128xi32>
      %19 = vector.broadcast %9 : i32 to vector<9x128xi32>
      %20 = arith.addi %19, %18 : vector<9x128xi32>
      %c8_i32_9 = arith.constant 8 : i32
      %21 = vector.broadcast %c8_i32_9 : i32 to vector<9x128xi32>
      %22 = arith.cmpi slt, %20, %21 : vector<9x128xi32>
      %c0_10 = arith.constant 0 : index
      %c0_11 = arith.constant 0 : index
      %23 = vector.load %arg4[%c0_10, %c0_11] : memref<8x128xf32, #tpu.memory_space<vmem>>, vector<8x128xf32>
      %cst_12 = arith.constant 0.000000e+00 : f32
      %24 = vector.broadcast %cst_12 : f32 to vector<9x128xf32>
      %25 = arith.select %22, %6, %24 : vector<9x128xi1>, vector<9x128xf32>
      %26 = vector.shape_cast %25 : vector<9x128xf32> to vector<1x9x128xf32>
      %cst_13 = arith.constant dense<0.000000e+00> : vector<1xf32>
      %27 = vector.multi_reduction <add>, %26, %cst_13 [1, 2] : vector<1x9x128xf32> to vector<1xf32>
      %28 = vector.shape_cast %27 : vector<1xf32> to vector<1x1x1xf32>
      %29 = vector.extract %28[0, 0, 0] : f32 from vector<1x1x1xf32>
      %30 = vector.broadcast %29 : f32 to vector<8x128xf32>
      %31 = arith.addf %23, %30 : vector<8x128xf32>
      %c0_14 = arith.constant 0 : index
      %c0_15 = arith.constant 0 : index
      %32 = vector.load %arg4[%c0_14, %c0_15] : memref<8x128xf32, #tpu.memory_space<vmem>>, vector<8x128xf32>
      tpu.vector_store %arg4[%c0_14, %c0_15], %31 {strides = array<i32>} : memref<8x128xf32, #tpu.memory_space<vmem>>, vector<8x128xf32>,
    } else {
    }
    return
  }
  func.func @transform_0(%arg0: i32, %arg1: i32) -> (i32, i32) {
    %c1_i32 = arith.constant 1 : i32
    %0 = arith.muli %arg0, %c1_i32 : i32
    %1 = arith.addi %0, %arg1 : i32
    %c0_i32 = arith.constant 0 : i32
    %2 = arith.minsi %1, %c0_i32 : i32
    %c0_i32_0 = arith.constant 0 : i32
    %c0_i32_1 = arith.constant 0 : i32
    return %c0_i32_0, %2 : i32, i32
  }
  func.func @transform_1(%arg0: i32, %arg1: i32) -> (i32, i32) {
    %c0_i32 = arith.constant 0 : i32
    %c0_i32_0 = arith.constant 0 : i32
    %c0_i32_1 = arith.constant 0 : i32
    return %c0_i32, %c0_i32_0 : i32, i32
  }
  func.func @transform_2(%arg0: i32, %arg1: i32) -> (i32, i32) {
    %c0_i32 = arith.constant 0 : i32
    %c0_i32_0 = arith.constant 0 : i32
    return %arg0, %c0_i32 : i32, i32
  }
}

</mosaic_0001>

<bundles_post_ra>
// kernel: tpu_custom_call.1
= control target key start
LH: loop header
LB: loop body
LE: loop exit
PB: predicated region body
PF: predicated region fallthrough
CT: control target
= control target key end

     0   :  { %7 = vsyncpa [#allocation3], 0  ;;  %s893_s0 = inlined_call_operand.hbm [shape: f32[9,128], index: 0, kind: input, shape index: {}]   ;;  %s894_s1 = inlined_call_operand.hbm [shape: f32[9,9], index: 1, kind: input, shape index: {}]   ;;  %s895_s2 = inlined_call_operand.hbm [shape: f32[16,128], index: 2, kind: output, shape index: {}]  }
   0x1   :  { %9 = vsyncpa [#allocation3 + $0x1], 0 }
   0x2   :  { %10 = vsyncpa [#allocation6], 0 }
   0x3   :  { %11 = vsyncpa [#allocation4], 0 }
   0x4   :  { %13 = vsyncpa [#allocation4 + $0x1], 0  ;;  %s717_s9 = smov 0   ;;  %s719_s10 = smov 0  }
   0x5   :  { %s721_s11 = smov 0   ;;  %s723_s12 = smov 0  }
   0x6   :  { %s725_s13 = smov 0   ;;  %s727_s14 = smov 0  }
   0x7   :  { %s729_s15 = smov 0   ;;  %s731_s16 = smov 0  }
   0x8 LB: > { %s401_s17 = sadd.s32 4294967295, %s695_s16   ;;  %s402_s18 = sadd.s32 4294967294, %s695_s16   ;;  %s695_s16 = sphi %s731_s16, %s19_s16   ;;  %s691_s15 = sphi %s729_s15, %s907_s15   ;;  %s687_s14 = sphi %s727_s14, %s906_s14   ;;  %s683_s13 = sphi %s725_s13, %s883_s13   ;;  %s679_s12 = sphi %s723_s12, %s905_s12   ;;  %s675_s11 = sphi %s721_s11, %s904_s11   ;;  %s671_s10 = sphi %s719_s10, %s903_s10   ;;  %s667_s9 = sphi %s717_s9, %s902_s9  }
   0x9   : > { %p57_p0 = scmp.ne.s32.totalorder %s683_s13, %s679_s12  ;;  %p758_p1 = scmp.eq.s32.totalorder %s401_s17, 0 }
   0xa   : > { %p101_p2 = scmp.ne.s32.totalorder %s675_s11, %s671_s10  ;;  %p102_p3 = scmp.eq.s32.totalorder %s401_s17, 1 }
   0xb   : > { %p766_p4 = por %p758_p1, %p57_p0  ;;  %p107_p5 = scmp.ne.s32.totalorder %s671_s10, %s667_s9 }
   0xc   : > { %p772_p6 = por %p102_p3, %p101_p2  ;;  %p108_p7 = scmp.eq.s32.totalorder %s402_s18, 1 }
   0xd   : > { %p403_p8 = scmp.ge.s32.totalorder %s695_s16, 1  ;;  %p115_p9 = scmp.lt.s32.totalorder %s695_s16, 3 }
   0xe   : > { %p778_p10 = por %p108_p7, %p107_p5  ;;  %s126_s26 = sshll.u32 %s894_s1, 4  ;;  %s127_s26 = int_to_ptr.hbm [resolvable:$true] %s126_s26 }
   0xf   : > { %p782_p11 = pnand %p403_p8, %p115_p9  ;;  %s697_s27 = smov [#allocation5]  }
  0x10   : > { %s128_s28 = sshll.u32 %s697_s27, 4  ;;  %s698_s29 = smov 128   ;;  %s129_s28 = int_to_ptr.vmem [resolvable:$true] %s128_s28 }
  0x11   : > { %p436_p12 = pneg %p782_p11  ;;  %s699_s30 = smov 8  }
  0x12   : > { %s31_s3 = sadd.s32 1, %s691_s15  ;;  %p664_p3 = scmp.ne.s32.totalorder %s683_s13, 0 }
  0x13   : > { %p437_p13 = pnand %p436_p12, %p758_p1  ;;  %p33_p2 = scmp.ge.s32.totalorder %s31_s3, 2 }
  0x14   : > { %p52_p5 = scmp.eq.s32.totalorder %s695_s16, 0  ;;  %s91_s5 = sadd.s32 1, %s675_s11 }
  0x15   : > { %439 = dma.hbm_to_vmem [thread:$0]  (!%p437_p13), %s127_s26, 256, %s129_s28, [#allocation6], %s698_s29, %s698_s29, %s699_s30  }
  0x16   : > { %s909_s3 = smov (%p33_p2, %s31_s3), 0  ;;  %p53_p8 = por %p664_p3, %p52_p5 }
  0x17   : > { %s88_s4 = ssub.s32 %s691_s15, %s909_s3  ;;  %p449_p9 = scmp.lt.s32.totalorder %s695_s16, 2 }
  0x18   : > { %p89_p7 = scmp.eq.s32.totalorder %s88_s4, 0  ;;  %s154_s12 = sshll.u32 %s893_s0, 4  ;;  %s155_s12 = int_to_ptr.hbm [resolvable:$true] %s154_s12 }
  0x19   : > { %s700_s17 = smov [#allocation2]   ;;  %p441_p12 = pnand %p449_p9, %p53_p8 }
  0x1a   : > { %s807_s6 = scalar_select %p89_p7, %s675_s11, %s91_s5  }
  0x1b   : > { %s156_s18 = sshll.u32 %s700_s17, 4  ;;  %s558_s24 = sshra.s32 %s155_s12, 4  ;;  %s157_s18 = int_to_ptr.vmem [resolvable:$true] %s156_s18  ;;  %s559_s24 = int_to_ptr.hbm [resolvable:$true] %s558_s24 }
  0x1c   : > { %s560_s25 = scalar_lea.hbm %s559_s24, 16  ;;  %p562_p2 = pneg %p441_p12 }
  0x1d   : > { %p561_p13 = scmp.ne.s32.totalorder %s559_s24, %s560_s25  ;;  %s565_s28 = scalar_lea.hbm %s893_s0, 16 }
  0x1e   : > { %p567_p5 = scmp.lt.s32.totalorder %s565_s28, %s560_s25 }
  0x1f   : > { %p563_p0 = pnand %p562_p2, %p561_p13 }
  0x21   : > { %p564_p3 = pneg %p563_p0 }
  0x23   : > { %p569_p7 = pnand %p567_p5, %p564_p3 }
  0x25   : > { %572 = shalt.err (!%p569_p7)
}
  0x26   : > { %443 = dma.hbm_to_vmem [thread:$0]  (!%p441_p12), %s155_s12, 256, %s157_s18, [#allocation3], %s698_s29, %s698_s29, %s699_s30  }
  0x27   : > { %168 = sbr.rel (%p782_p11) target bundleno = 580 (0x244), region = 28  ;;  %s170_s4 = sand.u32 (!%p782_p11), 1, %s683_s13  }
  0x28   : > { %s409_s5 = sshll.u32 (!%p782_p11), %s170_s4, 4  ;;  %s171_s7 = scalar_lea.sflag (!%p782_p11), [#allocation3], %s170_s4 }
  0x29   : > { %s174_s8 = scalar_lea.vmem (!%p782_p11), [#allocation2], %s409_s5 }
  0x2c   : > { %653 = dma.done.wait (%p766_p4), %s171_s7, 256  }
  0x2d   : > { %655 = vsyncadd (%p766_p4), %s171_s7, 4294967040 }
  0x2e   : > { %657 = dma.done.wait (%p758_p1), [#allocation6], 256  }
  0x2f   : > { %659 = vsyncadd (%p758_p1), [#allocation6], 4294967040  ;;  %s198_s23 = sand.u32 1, %s671_s10   ;;  %v701_v0 = vmov 0.0   ;;  %vm220_vm0 = vcmask 1040384   ;;  %v209_v2 = vld [vmem:[%s174_s8] sm:$0xff] }
  0x30   : > { %s411_s29 = sshll.u32 %s198_s23, 3  ;;  %v210_v1 = vld [vmem:[%s174_s8 + $0x8] sm:$0x1]  ;;  %v211_v3 = vld [vmem:[#allocation5] sm:$0xff]  ;;  %vm213_vm1 = vcmask 72704   ;;  %s415_s19 = sshll.u32 %s687_s14, 7 }
  0x31   : > { %s832_s30 = scalar_lea.vmem [#allocation7], %s411_s29  ;;  %412 = vmatpush.msk.msra.mxu0 %vm220_vm0, %v210_v1  ;;  %422 = vmatpush.msk.msra.mxu1 %vm220_vm0, %v210_v1  ;;  %v212_v4 = vld [vmem:[#allocation5 + $0x8] sm:$0x1]  ;;  %s251_s20 = sadd.s32 128, %s415_s19 }
  0x32   : > { %208 = vst [vmem:[%s832_s30] sm:$0xff] %v701_v0  ;;  %p416_p1 = scmp.gt.s32.totalorder %s251_s20, 8 }
  0x33   : > { %239 = vmatpush.msra.mxu0 %v209_v2  ;;  %423 = vmatpush.msra.mxu1 %v209_v2 }
  0x34   : > { %413 = vmatmul.msk.f32.vlgmr.msra.gmra.mxu0 %vm213_vm1, %v211_v3  ;;  %414 = vmatmul.msk.f32.vlgmr.msra.gmra.mxu1 %vm213_vm1, %v212_v4 }
  0xae   : > { %255 = sbr.rel (%p416_p1) target bundleno = 365 (0x16d), region = 44 }
  0xb1   : > { %v241_v5 = vpop.f32.mrf.mxu0  ;;  %v244_v6 = vpop.f32.mrf.mxu1 }
  0xb2   : > { %v247_v7 = vand.u32 2147483647, %v241_v5  ;;  %v248_v8 = vand.u32 2147483647, %v244_v6 }
  0xb3   : > { %v256_v18 = vld [vmem:[%s832_s30] sm:$0xff] }
  0xb4   : > { %v257_v9 = vsel %vm220_vm0, %v248_v8, 0.0 }
  0xb5   : > { %v258_v10 = vadd.f32 %v257_v9, %v247_v7 }
  0xb7   : > { %259 = vadd.xlane.f32.xlu0 %v258_v10 }
 0x12a   : > { %v260_v11 = vpop.xlane.xlu0 %259 }
 0x12b   : > { %v261_v12 = vrot.slane %v260_v11, 4 }
 0x12d   : > { %v262_v13 = vadd.f32 %v261_v12, %v260_v11 }
 0x12f   : > { %v263_v14 = vrot.slane %v262_v13, 2 }
 0x131   : > { %v264_v15 = vadd.f32 %v263_v14, %v262_v13 }
 0x133   : > { %v265_v16 = vrot.slane %v264_v15, 1 }
 0x135   : > { %v266_v17 = vadd.f32 %v265_v16, %v264_v15 }
 0x137   : > { %424 = vpush %v266_v17 }
 0x168   : > { %s425_s12 = spop %424 }
 0x169   : > { %v268_v19 = vstv %s425_s12 }
 0x16a   : > { %v269_v20 = vadd.f32 %v268_v19, %v256_v18 }
 0x16c   : > { %270 = vst [vmem:[%s832_s30] sm:$0xff] %v269_v20 }
 0x16d PF: > { %p417_p4 = scmp.le.s32.totalorder %s251_s20, 8 }
 0x16f   : > { %274 = sbr.rel (%p417_p4) target bundleno = 565 (0x235), region = 48 }
 0x174   : > { %v275_v21 = vlaneseq  ;;  %v277_v22 = vstv %s415_s19  ;;  %v280_v36 = vld [vmem:[%s832_s30] sm:$0xff] }
 0x176   : > { %v276_v23 = vand.u32 127, %v275_v21 }
 0x178   : > { %v278_v24 = vadd.s32 %v277_v22, %v276_v23 }
 0x17a   : > { %vm279_vm2 = vcmp.lt.s32.totalorder %v278_v24, 8 }
 0x17b   : > { %v281_v25 = vsel %vm279_vm2, %v247_v7, 0.0  ;;  %v282_v26 = vsel %vm279_vm2, %v248_v8, 0.0 }
 0x17c   : > { %v283_v27 = vsel %vm220_vm0, %v282_v26, 0.0 }
 0x17d   : > { %v284_v28 = vadd.f32 %v283_v27, %v281_v25 }
 0x17f   : > { %285 = vadd.xlane.f32.xlu0 %v284_v28 }
 0x1f2   : > { %v286_v29 = vpop.xlane.xlu0 %285 }
 0x1f3   : > { %v287_v30 = vrot.slane %v286_v29, 4 }
 0x1f5   : > { %v288_v31 = vadd.f32 %v287_v30, %v286_v29 }
 0x1f7   : > { %v289_v32 = vrot.slane %v288_v31, 2 }
 0x1f9   : > { %v290_v33 = vadd.f32 %v289_v32, %v288_v31 }
 0x1fb   : > { %v291_v34 = vrot.slane %v290_v33, 1 }
 0x1fd   : > { %v292_v35 = vadd.f32 %v291_v34, %v290_v33 }
 0x1ff   : > { %426 = vpush %v292_v35 }
 0x230   : > { %s427_s17 = spop %426 }
 0x231   : > { %v294_v37 = vstv %s427_s17 }
 0x232   : > { %v295_v38 = vadd.f32 %v294_v37, %v280_v36 }
 0x234   : > { %296 = vst [vmem:[%s832_s30] sm:$0xff] %v295_v38 }
 0x235 PF: > { %s419_s18 = sshll.u32 %s687_s14, 3  ;;  %s310_s27 = sshll.u32 %s832_s30, 4  ;;  %s311_s27 = int_to_ptr.vmem [resolvable:$true] %s310_s27 }
 0x236   : > { %s308_s26 = scalar_lea.hbm %s895_s2, %s419_s18  ;;  %s298_s4 = scalar_lea.sflag [#allocation4], %s198_s23 }
 0x237   : > { %s312_s28 = sshll.u32 %s308_s26, 4  ;;  %s608_s14 = scalar_lea.hbm %s895_s2, 16  ;;  %s313_s28 = int_to_ptr.hbm [resolvable:$true] %s312_s28 }
 0x238   : > { %s602_s5 = sshra.s32 %s313_s28, 4  ;;  %s603_s5 = int_to_ptr.hbm [resolvable:$true] %s602_s5 }
 0x239   : > { %s604_s7 = scalar_lea.hbm %s603_s5, 8  ;;  %p609_p9 = scmp.lt.s32.totalorder %s603_s5, %s895_s2 }
 0x23a   : > { %p605_p11 = scmp.ne.s32.totalorder %s603_s5, %s604_s7  ;;  %p610_p12 = scmp.lt.s32.totalorder %s608_s14, %s604_s7 }
 0x23c   : > { %p606_p0 = pnand %p605_p11, %p772_p6  ;;  %p611_p13 = por %p610_p12, %p609_p9 }
 0x23e   : > { %p607_p8 = pneg %p606_p0 }
 0x240   : > { %p612_p2 = pnand %p611_p13, %p607_p8 }
 0x242   : > { %615 = shalt.err (!%p612_p2)
}
 0x243   : > { %434 = dma.vmem_to_hbm [thread:$0]  (%p772_p6), %s311_s27, 128, %s313_s28, %s298_s4  }
 0x244 PF: > { %s324_s23 = sand.u32 1, %s667_s9   ;;  %p901_p3 = scmp.ge.s32.totalorder %s695_s16, 2 }
 0x245   : > { %s325_s30 = scalar_lea.sflag [#allocation4], %s324_s23 }
 0x246   : > { %p445_p5 = pnand %p901_p3, %p778_p10 }
 0x248   : > { %p446_p7 = pneg %p445_p5 }
 0x24a   : > { %661 = dma.done.wait (%p446_p7), %s325_s30, 128  }
 0x24b   : > { %663 = vsyncadd (%p446_p7), %s325_s30, 4294967168  ;;  %s19_s16 = sadd.s32 1, %s695_s16   ;;  %s902_s9 = smov %s671_s10 }
 0x24c   : > { %p16_p1 = scmp.ge.s32.totalorder %s19_s16, 4   ;;  %s903_s10 = smov %s675_s11 }
 0x24d   : > { %s904_s11 = smov %s807_s6  ;;  %s905_s12 = smov %s683_s13 }
 0x24e   : > { %s883_s13 = smov 0   ;;  %s906_s14 = smov %s691_s15 }
 0x24f   : > { %s907_s15 = smov %s909_s3  ;;  %18 = sbr.rel (!%p16_p1) target bundleno = 8 (0x8), region = 89 }
 0x254   :  { %331 = vsyncpa [#allocation3], 1 }
 0x255   :  { %333 = vsyncpa [#allocation3 + $0x1], 1 }
 0x256   :  { %334 = vsyncpa [#allocation6], 1 }
 0x257   :  { %335 = vsyncpa [#allocation4], 1 }
 0x258   :  { %337 = vsyncpa [#allocation4 + $0x1], 1 }

</bundles_post_ra>
